<compile_context>
chip_gen: v5e
topology: v5e:2x2
jax: 0.10.0
libtpu: 0.0.40
codegen_flags: <defaults>
</compile_context>

<pallas_src>
from functools import partial

import jax
import jax.numpy as jnp
from jax.experimental import pallas as pl
from jax.experimental.pallas import tpu as pltpu


def _round_up(x, m):
    return (x + m - 1) // m * m


# ---------------------------------------------------------------------------
# Fused kernel: 3x3 conv (SAME) + ReLU + mean over (T, H, W) + folded linear
# ---------------------------------------------------------------------------
def fused_kernel(xcol_ref, wconv_ref, bconv_ref, wf_ref, bf_ref, out_ref,
                 acc_ref, *, inv_norm):
    # xcol_ref : (1, 9*Cin, F*H*W) bf16 -- pre-packed lane-dense im2col columns
    #                                      (rows = tap*Cin + c, lanes = t*H*W+h*W+w)
    # wconv_ref: (Cout, 9*Cin)     bf16 -- transposed 3x3 taps
    # bconv_ref: (Cout, 1)         f32
    # wf_ref   : (Cout, NC)        f32  -- wfc @ w2 (folded linear head)
    # bf_ref   : (1, NC)           f32  -- bfc @ w2 + b2
    # out_ref  : (1, 1, NC)        f32  -- one row per video
    # acc_ref  : (Cout, 1)         f32  -- running sum over (T,H,W) of relu(conv)
    t = pl.program_id(1)

    @pl.when(t == 0)
    def _init():
        acc_ref[...] = jnp.zeros_like(acc_ref)

    # Single lane-dense MXU matmul: (Cout, 9Cin) @ (9Cin, F*H*W) -> (Cout, F*H*W).
    y = jnp.dot(wconv_ref[...], xcol_ref[0],
                preferred_element_type=jnp.float32)
    y = jnp.maximum(y + bconv_ref[...], 0.0)             # bias (lane bcast) + ReLU
    acc_ref[...] += jnp.sum(y, axis=-1, keepdims=True)   # dense cross-lane reduce

    @pl.when(t == pl.num_programs(1) - 1)
    def _finalize():
        feat = acc_ref[...] * inv_norm                               # (Cout, 1)
        logits = jnp.sum(wf_ref[...] * feat, axis=0, keepdims=True)  # (1, NC)
        out_ref[...] = (logits + bf_ref[...]).reshape(1, 1, -1)


# ---------------------------------------------------------------------------
# Host-side prep (runs inside the same jit -> fused by XLA)
# ---------------------------------------------------------------------------
def _im2col(x):
    """(B, T, C, H, W) f32 -> (B, 9*C, T*H*W) bf16 SAME-padded 3x3 im2col columns."""
    B, T, C, H, W = x.shape
    xb = x.astype(jnp.bfloat16)                              # halve HBM bytes first
    xpad = jnp.pad(xb, ((0, 0), (0, 0), (0, 0), (1, 1), (1, 1)))
    taps = [xpad[:, :, :, dy:dy + H, dx:dx + W]
            for dy in range(3) for dx in range(3)]           # 9 x (B,T,C,H,W)
    col = jnp.stack(taps, axis=2)                            # (B, T, 9, C, H, W)
    col = col.transpose(0, 2, 3, 1, 4, 5)                    # (B, 9, C, T, H, W)
    return col.reshape(B, 9 * C, T * H * W)


def _pick_frames_per_block(T, C, H, W, Cout, budget_bytes=24 << 20):
    """Largest F dividing T whose live VMEM blocks fit the budget (lane-padded)."""
    HW = H * W
    per_frame = (2 * _round_up(9 * C, 16) * HW * 2       # 2x double-buffered bf16 input
                 + 2 * _round_up(Cout, 8) * HW * 4)       # f32 conv output + epilogue temps
    fmax = max(1, budget_bytes // per_frame)
    cands = [f for f in range(1, T + 1)
             if T % f == 0 and ((f * HW) % 128 == 0 or f == T)]
    fits = [f for f in cands if f <= fmax]
    return max(fits) if fits else min(cands)


# ---------------------------------------------------------------------------
# Wrapper
# ---------------------------------------------------------------------------
@partial(jax.jit, static_argnames=("frames_per_block",))
def frame_feature_cut(x, params, *, frames_per_block=None):
    B, T, C, H, W = x.shape
    Cout = params["wconv"].shape[-1]
    NC = params["wfc"].shape[-1]

    F = frames_per_block or _pick_frames_per_block(T, C, H, W, Cout)
    assert T % F == 0, "frames_per_block must divide T"
    assert (F * H * W) % 128 == 0 or F == T, "block columns must be lane-tileable"
    nt = T // F

    # Pre-packed lane-dense im2col columns (cast + pad + gather fused by XLA).
    xcol = _im2col(x)                                                   # (B, 9C, T*H*W)

    wconv_t = params["wconv"].reshape(9 * C, Cout).T.astype(jnp.bfloat16)   # (Cout, 9C)
    bconv_t = params["bconv"].reshape(Cout, 1).astype(jnp.float32)          # (Cout, 1)
    # Fold the purely-linear tail: GAP -> wfc -> mean_T -> w2.
    w_fused = (params["wfc"] @ params["w2"]).astype(jnp.float32)            # (Cout, NC)
    b_fused = (params["bfc"] @ params["w2"] + params["b2"]).astype(jnp.float32)  # (1, NC)

    kernel = partial(fused_kernel, inv_norm=1.0 / float(T * H * W))

    out = pl.pallas_call(
        kernel,
        out_shape=jax.ShapeDtypeStruct((B, 1, NC), jnp.float32),
        grid=(B, nt),
        in_specs=[
            pl.BlockSpec((1, 9 * C, F * H * W), lambda b, t: (b, 0, t)),
            # Tiny constant-index weight blocks; the pipeline skips re-DMA when
            # the block index is unchanged across steps.
            pl.BlockSpec((Cout, 9 * C), lambda b, t: (0, 0)),
            pl.BlockSpec((Cout, 1), lambda b, t: (0, 0)),
            pl.BlockSpec((Cout, NC), lambda b, t: (0, 0)),
            pl.BlockSpec((1, NC), lambda b, t: (0, 0)),
        ],
        out_specs=pl.BlockSpec((1, 1, NC), lambda b, t: (b, 0, 0)),
        scratch_shapes=[pltpu.VMEM((Cout, 1), jnp.float32)],
        compiler_params=pltpu.CompilerParams(
            dimension_semantics=("parallel", "arbitrary"),
            vmem_limit_bytes=32 * 1024 * 1024),
    )(xcol, wconv_t, bconv_t, w_fused, b_fused)

    # mimic the (B, num_classes, 1) layout produced by AdaptiveAvgPool1d(1)+Linear
    return out.reshape(B, NC)[:, :, None]


# ---------------------------------------------------------------------------
# Pure-JAX reference (unfused; bf16 conv inputs to match kernel precision)
# ---------------------------------------------------------------------------
def reference(x, params):
    B, T, C, H, W = x.shape
    Cout = params["wconv"].shape[-1]
    NC = params["wfc"].shape[-1]
    xf = x.reshape(B * T, C, H, W).astype(jnp.bfloat16)
    w_hwio = params["wconv"].reshape(3, 3, C, Cout).astype(jnp.bfloat16)
    y = jax.lax.conv_general_dilated(
        xf, w_hwio, window_strides=(1, 1), padding="SAME",
        dimension_numbers=("NCHW", "HWIO", "NCHW"),
        preferred_element_type=jnp.float32)
    y = jnp.maximum(y + params["bconv"].reshape(1, Cout, 1, 1), 0.0)
    feat = y.mean(axis=(2, 3))                                  # (BT, Cout)
    logits = feat @ params["wfc"] + params["bfc"][0]            # (BT, NC)
    seq = logits.reshape(B, T, NC).transpose(0, 2, 1)           # (B, NC, T)
    pooled = seq.mean(axis=2)                                   # (B, NC)
    out = pooled @ params["w2"] + params["b2"][0]
    return out[:, :, None]                                      # (B, NC, 1)


if __name__ == "__main__":
    B, T, C, H, W = 2, 8, 4, 16, 16      # in_channels = 4
    Cout, NC = 8, 6                      # out_channels = 8, num_classes = 6

    key = jax.random.PRNGKey(0)
    kx, k1, k2, k3, k4, k5, k6 = jax.random.split(key, 7)
    x = jax.random.normal(kx, (B, T, C, H, W), jnp.float32)

    params = {
        "wconv": 0.1 * jax.random.normal(k1, (9, C, Cout), jnp.float32),
        "bconv": 0.1 * jax.random.normal(k2, (1, Cout), jnp.float32),
        "wfc":   0.1 * jax.random.normal(k3, (Cout, NC), jnp.float32),
        "bfc":   0.1 * jax.random.normal(k4, (1, NC), jnp.float32),
        "w2":    0.1 * jax.random.normal(k5, (NC, NC), jnp.float32),
        "b2":    0.1 * jax.random.normal(k6, (1, NC), jnp.float32),
    }

    ref = jax.block_until_ready(reference(x, params))

    # F=4 exercises the multi-step T reduction (grid=(2,2)); F=8 is one block per
    # video; None uses the VMEM-budget heuristic.
    for F in (4, 8, None):
        out = jax.block_until_ready(frame_feature_cut(x, params, frames_per_block=F))
        assert out.shape == (B, NC, 1), out.shape
        assert jnp.allclose(out, ref, rtol=1e-3, atol=1e-3), (
            "F=%s max abs err %f" % (F, float(jnp.max(jnp.abs(out - ref)))))

    print("KERNEL_OK")
</pallas_src>

<mosaic_0001>
module attributes {stable_mosaic.version = 11 : i64} {
  func.func @fused_kernel(%arg0: i32, %arg1: i32, %arg2: memref<1x36x1024xbf16, #tpu.memory_space<vmem>>, %arg3: memref<8x36xbf16, #tpu.memory_space<vmem>>, %arg4: memref<8x1xf32, #tpu.memory_space<vmem>>, %arg5: memref<8x6xf32, #tpu.memory_space<vmem>>, %arg6: memref<1x6xf32, #tpu.memory_space<vmem>>, %arg7: memref<1x1x6xf32, #tpu.memory_space<vmem>>, %arg8: memref<8x1xf32, #tpu.memory_space<vmem>>) attributes {dimension_semantics = [#tpu.dimension_semantics<parallel>, #tpu.dimension_semantics<arbitrary>], iteration_bounds = array<i64: 2, 2>, scalar_prefetch = 0 : i64, scratch_operands = 1 : i64, tpu.core_type = #tpu.core_type<tc>, window_params = [{transform_indices = @transform_0, window_bounds = array<i64: 1, 36, 1024>}, {pipeline_mode = #tpu.pipeline_mode<synchronous>, transform_indices = @transform_1, window_bounds = array<i64: 8, 36>}, {pipeline_mode = #tpu.pipeline_mode<synchronous>, transform_indices = @transform_2, window_bounds = array<i64: 8, 1>}, {pipeline_mode = #tpu.pipeline_mode<synchronous>, transform_indices = @transform_3, window_bounds = array<i64: 8, 6>}, {pipeline_mode = #tpu.pipeline_mode<synchronous>, transform_indices = @transform_4, window_bounds = array<i64: 1, 6>}, {transform_indices = @transform_5, window_bounds = array<i64: 1, 1, 6>}]} {
    %c0_i32 = arith.constant 0 : i32
    %0 = arith.cmpi eq, %arg1, %c0_i32 : i32
    %1 = arith.extui %0 : i1 to i32
    %c0_i32_0 = arith.constant 0 : i32
    %2 = arith.cmpi ne, %1, %c0_i32_0 : i32
    scf.if %2 {
      %cst_14 = arith.constant 0.000000e+00 : f32
      %20 = vector.broadcast %cst_14 : f32 to vector<8x1xf32>
      %c0_15 = arith.constant 0 : index
      %c0_16 = arith.constant 0 : index
      %21 = vector.load %arg8[%c0_15, %c0_16] : memref<8x1xf32, #tpu.memory_space<vmem>>, vector<8x1xf32>
      tpu.vector_store %arg8[%c0_15, %c0_16], %20 {strides = array<i32>} : memref<8x1xf32, #tpu.memory_space<vmem>>, vector<8x1xf32>,
    } else {
    }
    %c0 = arith.constant 0 : index
    %c0_1 = arith.constant 0 : index
    %3 = vector.load %arg3[%c0, %c0_1] : memref<8x36xbf16, #tpu.memory_space<vmem>>, vector<8x36xbf16>
    %c0_2 = arith.constant 0 : index
    %c0_3 = arith.constant 0 : index
    %c0_4 = arith.constant 0 : index
    %4 = vector.load %arg2[%c0_2, %c0_3, %c0_4] : memref<1x36x1024xbf16, #tpu.memory_space<vmem>>, vector<1x36x1024xbf16>
    %5 = vector.shape_cast %4 : vector<1x36x1024xbf16> to vector<36x1024xbf16>
    %cst = arith.constant dense<0.000000e+00> : vector<8x1024xf32>
    %6 = tpu.matmul %3, %5, %cst {dimension_numbers = #tpu.dot_dimension_numbers<[1], [0], [0], [1], [0, 0, 1, 1], [], []>} : vector<8x36xbf16>, vector<36x1024xbf16>, vector<8x1024xf32> -> vector<8x1024xf32>
    %c0_5 = arith.constant 0 : index
    %c0_6 = arith.constant 0 : index
    %7 = vector.load %arg4[%c0_5, %c0_6] : memref<8x1xf32, #tpu.memory_space<vmem>>, vector<8x1xf32>
    %8 = vector.broadcast %7 : vector<8x1xf32> to vector<8x1024xf32>
    %9 = arith.addf %6, %8 : vector<8x1024xf32>
    %cst_7 = arith.constant 0.000000e+00 : f32
    %10 = vector.broadcast %cst_7 : f32 to vector<8x1024xf32>
    %11 = arith.maximumf %9, %10 : vector<8x1024xf32>
    %c0_8 = arith.constant 0 : index
    %c0_9 = arith.constant 0 : index
    %12 = vector.load %arg8[%c0_8, %c0_9] : memref<8x1xf32, #tpu.memory_space<vmem>>, vector<8x1xf32>
    %cst_10 = arith.constant dense<0.000000e+00> : vector<8xf32>
    %13 = vector.multi_reduction <add>, %11, %cst_10 [1] : vector<8x1024xf32> to vector<8xf32>
    %14 = vector.shape_cast %13 : vector<8xf32> to vector<8x1xf32>
    %15 = arith.addf %12, %14 : vector<8x1xf32>
    %c0_11 = arith.constant 0 : index
    %c0_12 = arith.constant 0 : index
    %16 = vector.load %arg8[%c0_11, %c0_12] : memref<8x1xf32, #tpu.memory_space<vmem>>, vector<8x1xf32>
    tpu.vector_store %arg8[%c0_11, %c0_12], %15 {strides = array<i32>} : memref<8x1xf32, #tpu.memory_space<vmem>>, vector<8x1xf32>,
    %c1_i32 = arith.constant 1 : i32
    %17 = arith.cmpi eq, %arg1, %c1_i32 : i32
    %18 = arith.extui %17 : i1 to i32
    %c0_i32_13 = arith.constant 0 : i32
    %19 = arith.cmpi ne, %18, %c0_i32_13 : i32
    scf.if %19 {
      %c0_14 = arith.constant 0 : index
      %c0_15 = arith.constant 0 : index
      %20 = vector.load %arg8[%c0_14, %c0_15] : memref<8x1xf32, #tpu.memory_space<vmem>>, vector<8x1xf32>
      %cst_16 = arith.constant 4.8828125E-4 : f32
      %21 = vector.broadcast %cst_16 : f32 to vector<8x1xf32>
      %22 = arith.mulf %20, %21 : vector<8x1xf32>
      %c0_17 = arith.constant 0 : index
      %c0_18 = arith.constant 0 : index
      %23 = vector.load %arg5[%c0_17, %c0_18] : memref<8x6xf32, #tpu.memory_space<vmem>>, vector<8x6xf32>
      %24 = vector.broadcast %22 : vector<8x1xf32> to vector<8x6xf32>
      %25 = arith.mulf %23, %24 : vector<8x6xf32>
      %cst_19 = arith.constant dense<0.000000e+00> : vector<6xf32>
      %26 = vector.multi_reduction <add>, %25, %cst_19 [0] : vector<8x6xf32> to vector<6xf32>
      %27 = vector.shape_cast %26 : vector<6xf32> to vector<1x6xf32>
      %c0_20 = arith.constant 0 : index
      %c0_21 = arith.constant 0 : index
      %28 = vector.load %arg6[%c0_20, %c0_21] : memref<1x6xf32, #tpu.memory_space<vmem>>, vector<1x6xf32>
      %29 = arith.addf %27, %28 : vector<1x6xf32>
      %30 = vector.shape_cast %29 : vector<1x6xf32> to vector<1x1x6xf32>
      %c0_22 = arith.constant 0 : index
      %c0_23 = arith.constant 0 : index
      %c0_24 = arith.constant 0 : index
      %31 = vector.load %arg7[%c0_22, %c0_23, %c0_24] : memref<1x1x6xf32, #tpu.memory_space<vmem>>, vector<1x1x6xf32>
      tpu.vector_store %arg7[%c0_22, %c0_23, %c0_24], %30 {strides = array<i32>} : memref<1x1x6xf32, #tpu.memory_space<vmem>>, vector<1x1x6xf32>,
    } else {
    }
    return
  }
  func.func @transform_0(%arg0: i32, %arg1: i32) -> (i32, i32, i32) {
    %c0_i32 = arith.constant 0 : i32
    %c0_i32_0 = arith.constant 0 : i32
    return %arg0, %c0_i32, %arg1 : i32, i32, i32
  }
  func.func @transform_1(%arg0: i32, %arg1: i32) -> (i32, i32) {
    %c0_i32 = arith.constant 0 : i32
    %c0_i32_0 = arith.constant 0 : i32
    %c0_i32_1 = arith.constant 0 : i32
    return %c0_i32, %c0_i32_0 : i32, i32
  }
  func.func @transform_2(%arg0: i32, %arg1: i32) -> (i32, i32) {
    %c0_i32 = arith.constant 0 : i32
    %c0_i32_0 = arith.constant 0 : i32
    %c0_i32_1 = arith.constant 0 : i32
    return %c0_i32, %c0_i32_0 : i32, i32
  }
  func.func @transform_3(%arg0: i32, %arg1: i32) -> (i32, i32) {
    %c0_i32 = arith.constant 0 : i32
    %c0_i32_0 = arith.constant 0 : i32
    %c0_i32_1 = arith.constant 0 : i32
    return %c0_i32, %c0_i32_0 : i32, i32
  }
  func.func @transform_4(%arg0: i32, %arg1: i32) -> (i32, i32) {
    %c0_i32 = arith.constant 0 : i32
    %c0_i32_0 = arith.constant 0 : i32
    %c0_i32_1 = arith.constant 0 : i32
    return %c0_i32, %c0_i32_0 : i32, i32
  }
  func.func @transform_5(%arg0: i32, %arg1: i32) -> (i32, i32, i32) {
    %c0_i32 = arith.constant 0 : i32
    %c0_i32_0 = arith.constant 0 : i32
    %c0_i32_1 = arith.constant 0 : i32
    return %arg0, %c0_i32, %c0_i32_0 : i32, i32, i32
  }
}

</mosaic_0001>

<bundles_post_ra>
// kernel: frame_feature_cut.1
= control target key start
LH: loop header
LB: loop body
LE: loop exit
PB: predicated region body
PF: predicated region fallthrough
CT: control target
= control target key end

     0   :  { %s1308_s0 = inlined_call_operand.vmem [shape: bf16[2,36,2048], index: 0, kind: input, shape index: {}]   ;;  %s1309_s1 = inlined_call_operand.vmem [shape: bf16[8,36], index: 1, kind: input, shape index: {}]   ;;  %s1310_s2 = inlined_call_operand.vmem [shape: f32[8,1], index: 2, kind: input, shape index: {}]   ;;  %s1311_s3 = inlined_call_operand.vmem [shape: f32[8,6], index: 3, kind: input, shape index: {}]   ;;  %s1312_s4 = inlined_call_operand.vmem [shape: f32[1,6], index: 4, kind: input, shape index: {}]   ;;  %s1313_s5 = inlined_call_operand.hbm [shape: f32[2,1,6], index: 5, kind: output, shape index: {}]  }
   0x1   :  { %1315 = sst [smem:[#allocation8_spill]] %s1308_s0 }
   0x2   :  { %10 = vsyncpa [#allocation5], 0 }
   0x3   :  { %12 = vsyncpa [#allocation5 + $0x1], 0  ;;  %s1037_s18 = smov 0   ;;  %s1039_s19 = smov 0  }
   0x4   :  { %s1041_s20 = smov 0   ;;  %s1043_s21 = smov 0  }
   0x5   :  { %s1045_s22 = smov 0   ;;  %s1047_s23 = smov 0  }
   0x6   :  { %s1049_s24 = smov 0   ;;  %s1051_s25 = smov 0  }
   0x7   :  { %s1053_s26 = smov 0   ;;  %s1055_s27 = smov 0  }
   0x8 LB: > { %s698_s28 = sadd.s32 4294967295, %s1002_s27   ;;  %s699_s29 = sadd.s32 4294967294, %s1002_s27   ;;  %s1002_s27 = sphi %s1055_s27, %s18_s27   ;;  %s998_s26 = sphi %s1053_s26, %s1330_s26   ;;  %s994_s25 = sphi %s1051_s25, %s1329_s25   ;;  %s990_s24 = sphi %s1049_s24, %s1328_s24   ;;  %s986_s23 = sphi %s1047_s23, %s1327_s23   ;;  %s982_s22 = sphi %s1045_s22, %s1326_s22   ;;  %s978_s21 = sphi %s1043_s21, %s1325_s21   ;;  %s974_s20 = sphi %s1041_s20, %s1324_s20   ;;  %s970_s19 = sphi %s1039_s19, %s1323_s19   ;;  %s966_s18 = sphi %s1037_s18, %s1322_s18  }
   0x9   : > { %s27_s30 = sadd.s32 1, %s994_s25  ;;  %s30_s6 = sadd.s32 1, %s998_s26 }
   0xa   : > { %p28_p0 = scmp.ge.s32.totalorder %s27_s30, 2  ;;  %s39_s7 = sadd.s32 1, %s982_s22 }
   0xb   : > { %p46_p1 = scmp.ne.s32.totalorder %s982_s22, %s978_s21  ;;  %p47_p2 = scmp.eq.s32.totalorder %s1002_s27, 0 }
   0xc   : > { %s1332_s30 = smov (%p28_p0, %s27_s30), 0  ;;  %s1334_s6 = smov (!%p28_p0, %s30_s6), %s998_s26 }
   0xd   : > { %s35_s8 = ssub.s32 %s994_s25, %s1332_s30  ;;  %p1100_p3 = por %p47_p2, %p46_p1 }
   0xe   : > { %p32_p4 = scmp.ge.s32.totalorder %s1334_s6, 2  ;;  %s149_s10 = sadd.s32 1, %s974_s20 }
   0xf   : > { %p159_p5 = scmp.ne.s32.totalorder %s974_s20, %s970_s19  ;;  %p160_p6 = scmp.eq.s32.totalorder %s698_s28, 3 }
  0x10   : > { %s1336_s6 = smov (%p32_p4, %s1334_s6), 0  ;;  %p165_p8 = scmp.ne.s32.totalorder %s970_s19, %s966_s18 }
  0x11   : > { %1317 = sst [smem:[#allocation7_spill]] %s1336_s6  ;;  %p1109_p7 = por %p160_p6, %p159_p5 }
  0x12   : > { %s34_s12 = ssub.s32 %s998_s26, %s1336_s6  ;;  %p166_p9 = scmp.eq.s32.totalorder %s699_s29, 3 }
  0x13   : > { %s36_s13 = sor.u32 %s35_s8, %s34_s12  ;;  %p147_p10 = scmp.eq.s32.totalorder %s34_s12, 0 }
  0x14   : > { %p37_p11 = scmp.eq.s32.totalorder %s36_s13, 0  ;;  %p1117_p12 = por %p166_p9, %p165_p8 }
  0x15   : > { %s1122_s15 = scalar_select %p147_p10, %s974_s20, %s149_s10  }
  0x16   : > { %s1125_s16 = scalar_select %p37_p11, %s982_s22, %s39_s7  }
  0x17   : > { %p701_p13 = scmp.ge.s32.totalorder %s1002_s27, 4 }
  0x19   : > { %194 = sbr.rel (%p701_p13) target bundleno = 60 (0x3c), region = 32 }
  0x1e   : > { %197 = sbr.rel (!%p1100_p3) target bundleno = 60 (0x3c), region = 36  ;;  %s199_s17 = sand.u32 (%p1100_p3), 1, %s982_s22  }
  0x1f   : > { %s797_s28 = smul.u32 (%p1100_p3), 160, %s199_s17  ;;  %s702_s29 = sshll.u32 (%p1100_p3), %s994_s25, 3 }
  0x20   : > { %s798_s8 = smul.u32 (%p1100_p3), 80, %s998_s26  ;;  %s1320_s0 = sld [smem:[#allocation8_spill]] (%p1100_p3) }
  0x21   : > { %s1141_s9 = scalar_lea.vmem (%p1100_p3), [#allocation3], %s797_s28 }
  0x22   : > { %s204_s12 = sadd.s32 (%p1100_p3), %s798_s8, %s702_s29 }
  0x23   : > { %s703_s13 = sshll.u32 %s204_s12, 2 }
  0x26   : > { %s1136_s7 = scalar_lea.vmem %s1320_s0, %s703_s13 }
  0x27   : > { %v219_v0 = vld [vmem:[%s1136_s7] sm:$0xff]  ;;  %v221_v1 = vld [vmem:[%s1136_s7 + $0x8] sm:$0xff]  ;;  %v223_v2 = vld [vmem:[%s1136_s7 + $0x10] sm:$0xff] }
  0x28   : > { %220 = vst [vmem:[%s1141_s9] sm:$0xff] %v219_v0  ;;  %v225_v3 = vld [vmem:[%s1136_s7 + $0x18] sm:$0xff]  ;;  %v227_v4 = vld [vmem:[%s1136_s7 + $0x40] sm:$0xff]  ;;  %v229_v5 = vld [vmem:[%s1136_s7 + $0x48] sm:$0xff] }
  0x29   : > { %222 = vst [vmem:[%s1141_s9 + $0x8] sm:$0xff] %v221_v1  ;;  %v231_v6 = vld [vmem:[%s1136_s7 + $0x50] sm:$0xff]  ;;  %v233_v7 = vld [vmem:[%s1136_s7 + $0x58] sm:$0xff]  ;;  %v235_v8 = vld [vmem:[%s1136_s7 + $0x80] sm:$0xff] }
  0x2a   : > { %224 = vst [vmem:[%s1141_s9 + $0x10] sm:$0xff] %v223_v2  ;;  %v237_v9 = vld [vmem:[%s1136_s7 + $0x88] sm:$0xff]  ;;  %v239_v10 = vld [vmem:[%s1136_s7 + $0x90] sm:$0xff]  ;;  %v241_v11 = vld [vmem:[%s1136_s7 + $0x98] sm:$0xff] }
  0x2b   : > { %226 = vst [vmem:[%s1141_s9 + $0x18] sm:$0xff] %v225_v3  ;;  %v243_v12 = vld [vmem:[%s1136_s7 + $0xc0] sm:$0xff]  ;;  %v245_v13 = vld [vmem:[%s1136_s7 + $0xc8] sm:$0xff]  ;;  %v247_v14 = vld [vmem:[%s1136_s7 + $0xd0] sm:$0xff] }
  0x2c   : > { %228 = vst [vmem:[%s1141_s9 + $0x20] sm:$0xff] %v227_v4  ;;  %v249_v15 = vld [vmem:[%s1136_s7 + $0xd8] sm:$0xff]  ;;  %v251_v16 = vld [vmem:[%s1136_s7 + $0x100] sm:$0xff]  ;;  %v253_v17 = vld [vmem:[%s1136_s7 + $0x108] sm:$0xff] }
  0x2d   : > { %230 = vst [vmem:[%s1141_s9 + $0x28] sm:$0xff] %v229_v5  ;;  %v255_v18 = vld [vmem:[%s1136_s7 + $0x110] sm:$0xff]  ;;  %v257_v19 = vld [vmem:[%s1136_s7 + $0x118] sm:$0xff] }
  0x2e   : > { %232 = vst [vmem:[%s1141_s9 + $0x30] sm:$0xff] %v231_v6 }
  0x2f   : > { %234 = vst [vmem:[%s1141_s9 + $0x38] sm:$0xff] %v233_v7 }
  0x30   : > { %236 = vst [vmem:[%s1141_s9 + $0x40] sm:$0xff] %v235_v8 }
  0x31   : > { %238 = vst [vmem:[%s1141_s9 + $0x48] sm:$0xff] %v237_v9 }
  0x32   : > { %240 = vst [vmem:[%s1141_s9 + $0x50] sm:$0xff] %v239_v10 }
  0x33   : > { %242 = vst [vmem:[%s1141_s9 + $0x58] sm:$0xff] %v241_v11 }
  0x34   : > { %244 = vst [vmem:[%s1141_s9 + $0x60] sm:$0xff] %v243_v12 }
  0x35   : > { %246 = vst [vmem:[%s1141_s9 + $0x68] sm:$0xff] %v245_v13 }
  0x36   : > { %248 = vst [vmem:[%s1141_s9 + $0x70] sm:$0xff] %v247_v14 }
  0x37   : > { %250 = vst [vmem:[%s1141_s9 + $0x78] sm:$0xff] %v249_v15 }
  0x38   : > { %252 = vst [vmem:[%s1141_s9 + $0x80] sm:$0xff] %v251_v16 }
  0x39   : > { %254 = vst [vmem:[%s1141_s9 + $0x88] sm:$0xff] %v253_v17 }
  0x3a   : > { %256 = vst [vmem:[%s1141_s9 + $0x90] sm:$0xff] %v255_v18 }
  0x3b   : > { %258 = vst [vmem:[%s1141_s9 + $0x98] sm:$0xff] %v257_v19 }
  0x3c PF: > { %p704_p0 = scmp.ge.s32.totalorder %s1002_s27, 1  ;;  %p263_p1 = scmp.lt.s32.totalorder %s1002_s27, 5 }
  0x3e   : > { %p264_p2 = pnand %p704_p0, %p263_p1 }
  0x3f   : > { %s270_s6 = sand.u32 (!%p264_p2), 1, %s978_s21   ;;  %s294_s17 = sand.u32 (!%p264_p2), 1, %s970_s19  }
  0x40   : > { %267 = sbr.rel (%p264_p2) target bundleno = 525 (0x20d), region = 59  ;;  %s1188_s8 = scalar_lea.vmem (!%p264_p2), [#allocation4], %s294_s17 }
  0x41   : > { %s799_s28 = smul.u32 (!%p264_p2), 160, %s270_s6  ;;  %p705_p3 = scmp.ne.s32.totalorder (!%p264_p2), %s986_s23, 0 }
  0x43   : > { %s1184_s29 = scalar_lea.vmem (!%p264_p2), [#allocation3], %s799_s28 }
  0x45   : > { %301 = sbr.rel (%p705_p3) target bundleno = 76 (0x4c), region = 67 }
  0x4a   : > { %vm302_vm0 = vcmask 7168   ;;  %v1004_v20 = vmov 0.0  }
  0x4b   : > { %303 = vst.msk [vmem:[#allocation2] sm:$0xff] %vm302_vm0, %v1004_v20 }
  0x4c PF: > { %v321_v21 = vld [vmem:[%s1184_s29 + $0x80] sm:$0x33]  ;;  %v322_v22 = vld [vmem:[%s1184_s29 + $0x88] sm:$0x33]  ;;  %vm435_vm1 = vcmask 1041408   ;;  %v325_v3 = vld [vmem:[%s1310_s2] sm:$0xff] }
  0x4d   : > { %v383_v23 = vunpack.c.l.b16 %v321_v21  ;;  %v384_v24 = vunpack.c.h.b16 %v321_v21  ;;  %v385_v25 = vunpack.c.l.b16 %v322_v22  ;;  %v386_v26 = vunpack.c.h.b16 %v322_v22  ;;  %v740_v27 = vld [vmem:[%s1184_s29 + $0x40] sm:$0xf]  ;;  %v789_v33 = vld [vmem:[%s1184_s29 + $0x44] sm:$0xf]  ;;  %v748_v35 = vld [vmem:[%s1184_s29 + $0x48] sm:$0xf] }
  0x4e   : > { %v793_v28 = vld [vmem:[%s1184_s29 + $0x5c] sm:$0xf0]  ;;  %v742_v34 = vld [vmem:[%s1184_s29 + $0x60] sm:$0xf0]  ;;  %v794_v36 = vld [vmem:[%s1184_s29 + $0x64] sm:$0xf0] }
  0x4f   : > { %v407_v29 = vpack.c.b16 %v383_v23, %v383_v23  ;;  %v408_v30 = vpack.c.b16 %v384_v24, %v384_v24  ;;  %v409_v31 = vpack.c.b16 %v385_v25, %v385_v25  ;;  %v410_v32 = vpack.c.b16 %v386_v26, %v386_v26  ;;  %v790_v37 = vld [vmem:[%s1184_s29 + $0x4c] sm:$0xf]  ;;  %v708_v43 = vld [vmem:[%s1184_s29] sm:$0xf]  ;;  %v781_v47 = vld [vmem:[%s1184_s29 + $0x4] sm:$0xf] }
  0x50   : > { %v750_v38 = vld [vmem:[%s1184_s29 + $0x68] sm:$0xf0]  ;;  %v741_v44 = vor.u32 %v793_v28, %v740_v27  ;;  %v745_v45 = vor.u32 %v789_v33, %v742_v34  ;;  %v785_v46 = vld [vmem:[%s1184_s29 + $0x1c] sm:$0xf0]  ;;  %v710_v48 = vld [vmem:[%s1184_s29 + $0x20] sm:$0xf0]  ;;  %v749_v49 = vor.u32 %v794_v36, %v748_v35 }
  0x51   : > { %v437_v39 = vsel %vm435_vm1, %v407_v29, 0  ;;  %v440_v40 = vsel %vm435_vm1, %v408_v30, 0  ;;  %v443_v41 = vsel %vm435_vm1, %v409_v31, 0  ;;  %v446_v42 = vsel %vm435_vm1, %v410_v32, 0  ;;  %v716_v51 = vld [vmem:[%s1184_s29 + $0x8] sm:$0xf] }
  0x52   : > { %465 = vmatpush.bf16.msra.mxu0 %v437_v39  ;;  %478 = vmatpush.bf16.msra.mxu1 %v440_v40  ;;  %v753_v50 = vor.u32 %v790_v37, %v750_v38  ;;  %v324_v52 = vld [vmem:[%s1184_s29 + $0x98] sm:$0x33]  ;;  %v323_v53 = vld [vmem:[%s1184_s29 + $0x90] sm:$0x33]  ;;  %v786_v54 = vld [vmem:[%s1184_s29 + $0x24] sm:$0xf0]  ;;  %v709_v61 = vor.u32 %v785_v46, %v708_v43  ;;  %v713_v62 = vor.u32 %v781_v47, %v710_v48 }
  0x53   : > { %491 = vmatpush.bf16.msra.mxu2 %v443_v41  ;;  %504 = vmatpush.bf16.msra.mxu3 %v446_v42  ;;  %v782_v55 = vld [vmem:[%s1184_s29 + $0xc] sm:$0xf]  ;;  %v389_v57 = vunpack.c.l.b16 %v324_v52  ;;  %v387_v58 = vunpack.c.l.b16 %v323_v53  ;;  %v390_v59 = vunpack.c.h.b16 %v324_v52  ;;  %v388_v60 = vunpack.c.h.b16 %v323_v53  ;;  %v764_v6 = vld [vmem:[%s1184_s29 + $0x58] sm:$0xf]  ;;  %v756_v11 = vld [vmem:[%s1184_s29 + $0x50] sm:$0xf] }
  0x54   : > { %v718_v56 = vld [vmem:[%s1184_s29 + $0x28] sm:$0xf0]  ;;  %v717_v1 = vor.u32 %v786_v54, %v716_v51  ;;  %v796_v7 = vld [vmem:[%s1184_s29 + $0x74] sm:$0xf0]  ;;  %v1005_v8 = vmov 0   ;;  %vm431_vm2 = vcmask 293888  }
  0x55   : > { %v413_v63 = vpack.c.b16 %v389_v57, %v389_v57  ;;  %v411_v0 = vpack.c.b16 %v387_v58, %v387_v58  ;;  %v721_v2 = vor.u32 %v782_v55, %v718_v56  ;;  %v414_v4 = vpack.c.b16 %v390_v59, %v390_v59  ;;  %890 = vset.pattern.permute.xlu0 %v1005_v8  ;;  %v795_v12 = vld [vmem:[%s1184_s29 + $0x6c] sm:$0xf0]  ;;  %v304_v13 = vld [vmem:[%s1309_s1] sm:$0xf]  ;;  %v792_v14 = vld [vmem:[%s1184_s29 + $0x5c] sm:$0xf] }
  0x56   : > { %466 = vmatpush.bf16.msra.mxu0 %v741_v44  ;;  %479 = vmatpush.bf16.msra.mxu1 %v745_v45  ;;  %v412_v5 = vpack.c.b16 %v388_v60, %v388_v60  ;;  %v766_v15 = vld [vmem:[%s1184_s29 + $0x78] sm:$0xf0]  ;;  %v791_v16 = vld [vmem:[%s1184_s29 + $0x54] sm:$0xf]  ;;  %v765_v19 = vor.u32 %v796_v7, %v764_v6  ;;  %v757_v20 = vor.u32 %v795_v12, %v756_v11  ;;  %v732_v22 = vld [vmem:[%s1184_s29 + $0x18] sm:$0xf] }
  0x57   : > { %492 = vmatpush.bf16.msra.mxu2 %v749_v49  ;;  %505 = vmatpush.bf16.msra.mxu3 %v753_v50  ;;  %v455_v9 = vsel %vm435_vm1, %v413_v63, 0  ;;  %v449_v10 = vsel %vm435_vm1, %v411_v0, 0  ;;  %v458_v17 = vsel %vm435_vm1, %v414_v4, 0  ;;  %v758_v21 = vld [vmem:[%s1184_s29 + $0x70] sm:$0xf0]  ;;  %v769_v26 = vor.u32 %v792_v14, %v766_v15  ;;  %v572_v12 = vld [vmem:[#allocation2] sm:$0xff] }
  0x58   : > { %328 = vperm.xlu0 %890, %v325_v3   ;;  %v452_v18 = vsel %vm435_vm1, %v412_v5, 0  ;;  %v788_v23 = vld [vmem:[%s1184_s29 + $0x34] sm:$0xf0]  ;;  %v724_v24 = vld [vmem:[%s1184_s29 + $0x10] sm:$0xf]  ;;  %v761_v27 = vor.u32 %v791_v16, %v758_v21  ;;  %vm583_vm3 = vcmask 7168  }
  0x59   : > { %v787_v25 = vld [vmem:[%s1184_s29 + $0x2c] sm:$0xf0]  ;;  %v783_v28 = vld [vmem:[%s1184_s29 + $0x14] sm:$0xf]  ;;  %v733_v29 = vor.u32 %v788_v23, %v732_v22  ;;  %v784_v32 = vld [vmem:[%s1184_s29 + $0x1c] sm:$0xf] }
  0x5a   : > { %467 = vmatpush.bf16.msra.mxu0 %v709_v61  ;;  %480 = vmatpush.bf16.msra.mxu1 %v713_v62  ;;  %v725_v30 = vor.u32 %v787_v25, %v724_v24  ;;  %v726_v31 = vld [vmem:[%s1184_s29 + $0x30] sm:$0xf0]  ;;  %v734_v33 = vld [vmem:[%s1184_s29 + $0x38] sm:$0xf0]  ;;  %p778_p4 = scmp.ne.s32.totalorder %s986_s23, 1 }
  0x5b   : > { %493 = vmatpush.bf16.msra.mxu2 %v717_v1  ;;  %506 = vmatpush.bf16.msra.mxu3 %v721_v2  ;;  %v729_v34 = vor.u32 %v783_v28, %v726_v31  ;;  %v737_v35 = vor.u32 %v784_v32, %v734_v33 }
  0x5d   : > { %770 = vmatmul.msk.bf16.vlgmr.msra.gmra.mxu0 %vm431_vm2, %v304_v13  ;;  %771 = vmatmul.msk.bf16.vlgmr.msra.gmra.mxu1 %vm431_vm2, %v304_v13 }
  0x5e   : > { %517 = vmatpush.bf16.msrb.mxu0 %v449_v10  ;;  %772 = vmatmul.msk.bf16.vlgmr.msra.gmra.mxu2 %vm431_vm2, %v304_v13 }
  0x5f   : > { %543 = vmatpush.bf16.msrb.mxu2 %v455_v9  ;;  %773 = vmatmul.msk.bf16.vlgmr.msra.gmra.mxu3 %vm431_vm2, %v304_v13 }
  0x60   : > { %556 = vmatpush.bf16.msrb.mxu3 %v458_v17  ;;  %530 = vmatpush.bf16.msrb.mxu1 %v452_v18 }
  0x62   : > { %518 = vmatpush.bf16.msrb.mxu0 %v757_v20 }
  0x63   : > { %544 = vmatpush.bf16.msrb.mxu2 %v765_v19 }
  0x64   : > { %557 = vmatpush.bf16.msrb.mxu3 %v769_v26  ;;  %531 = vmatpush.bf16.msrb.mxu1 %v761_v27 }
  0x66   : > { %519 = vmatpush.bf16.msrb.mxu0 %v725_v30 }
  0x67   : > { %545 = vmatpush.bf16.msrb.mxu2 %v733_v29 }
  0x68   : > { %532 = vmatpush.bf16.msrb.mxu1 %v729_v34  ;;  %558 = vmatpush.bf16.msrb.mxu3 %v737_v35 }
  0x6d   : > { %774 = vmatmul.msk.bf16.vlgmr.msrb.gmra.mxu0 %vm431_vm2, %v304_v13  ;;  %775 = vmatmul.msk.bf16.vlgmr.msrb.gmra.mxu1 %vm431_vm2, %v304_v13 }
  0x6e   : > { %776 = vmatmul.msk.bf16.vlgmr.msrb.gmra.mxu2 %vm431_vm2, %v304_v13 }
  0x6f   : > { %777 = vmatmul.msk.bf16.vlgmr.msrb.gmra.mxu3 %vm431_vm2, %v304_v13 }
  0xca   : > { %v329_v38 = vpop.permute.xlu0 %328 }
  0xda   : > { %v469_v36 = vpop.f32.mrf.mxu0  ;;  %v482_v37 = vpop.f32.mrf.mxu1 }
  0xdb   : > { %v470_v39 = vadd.f32 %v469_v36, %v329_v38  ;;  %v483_v40 = vadd.f32 %v482_v37, %v329_v38 }
  0xdd   : > { %v564_v46 = vmax.f32 %v470_v39, 0.0  ;;  %v565_v47 = vmax.f32 %v483_v40, 0.0 }
  0xdf   : > { %v573_v50 = vadd.f32 %v565_v47, %v564_v46 }
  0xe1   : > { %v495_v41 = vpop.f32.mrf.mxu2 }
  0xe2   : > { %v508_v42 = vpop.f32.mrf.mxu3  ;;  %v496_v43 = vadd.f32 %v495_v41, %v329_v38  ;;  %v471_v44 = vpop.f32.mrf.mxu0 }
  0xe3   : > { %v484_v45 = vpop.f32.mrf.mxu1  ;;  %v509_v49 = vadd.f32 %v508_v42, %v329_v38 }
  0xe4   : > { %v566_v48 = vmax.f32 %v496_v43, 0.0 }
  0xe5   : > { %v567_v54 = vmax.f32 %v509_v49, 0.0 }
  0xe6   : > { %v574_v53 = vadd.f32 %v573_v50, %v566_v48 }
  0xe8   : > { %v575_v59 = vadd.f32 %v574_v53, %v567_v54 }
  0xe9   : > { %v497_v51 = vpop.f32.mrf.mxu2 }
  0xea   : > { %v510_v52 = vpop.f32.mrf.mxu3  ;;  %v521_v55 = vpop.f32.mrf.mxu0 }
  0xeb   : > { %v534_v56 = vpop.f32.mrf.mxu1  ;;  %v522_v57 = vadd.f32 %v521_v55, %v329_v38 }
  0xec   : > { %v535_v60 = vadd.f32 %v534_v56, %v329_v38 }
  0xed   : > { %v568_v58 = vmax.f32 %v522_v57, 0.0 }
  0xee   : > { %v569_v0 = vmax.f32 %v535_v60, 0.0 }
  0xef   : > { %v576_v61 = vadd.f32 %v575_v59, %v568_v58 }
  0xf1   : > { %v547_v62 = vpop.f32.mrf.mxu2  ;;  %v577_v5 = vadd.f32 %v576_v61, %v569_v0 }
  0xf2   : > { %v560_v63 = vpop.f32.mrf.mxu3  ;;  %v548_v1 = vadd.f32 %v547_v62, %v329_v38  ;;  %v523_v3 = vpop.f32.mrf.mxu0 }
  0xf3   : > { %v561_v2 = vadd.f32 %v560_v63, %v329_v38  ;;  %v536_v4 = vpop.f32.mrf.mxu1 }
  0xf4   : > { %v570_v6 = vmax.f32 %v548_v1, 0.0 }
  0xf5   : > { %v571_v8 = vmax.f32 %v561_v2, 0.0 }
  0xf6   : > { %v578_v7 = vadd.f32 %v577_v5, %v570_v6 }
  0xf8   : > { %v579_v9 = vadd.f32 %v578_v7, %v571_v8 }
  0xf9   : > { %v549_v10 = vpop.f32.mrf.mxu2 }
  0xfa   : > { %v562_v11 = vpop.f32.mrf.mxu3  ;;  %580 = vadd.xlane.f32.xlu0 %v579_v9 }
 0x16c   : > { %588 = sbr.rel (%p778_p4) target bundleno = 511 (0x1ff), region = 71 }
 0x16d   : > { %v581_v13 = vpop.xlane.xlu0 %580 }
 0x16e   : > { %v582_v14 = vadd.f32 %v581_v13, %v572_v12 }
 0x170   : > { %584 = vst.msk [vmem:[#allocation2] sm:$0xff] %vm583_vm3, %v582_v14 }
 0x171   : > { %v1006_v16 = vmov 0   ;;  %v591_v18 = vld [vmem:[%s1311_s3] sm:$0xff]  ;;  %vm598_vm4 = vcmask 48128   ;;  %vm608_vm5 = vcmask 40960  }
 0x172   : > { %891 = vset.pattern.permute.xlu0 %v1006_v16  ;;  %v606_v27 = vld [vmem:[%s1312_s4] sm:$0x1] }
 0x177   : > { %v589_v15 = vld [vmem:[#allocation2] sm:$0xff] }
 0x178   : > { %v590_v17 = vmul.f32 0.00048828125, %v589_v15 }
 0x17a   : > { %594 = vperm.xlu0 %891, %v590_v17  }
 0x1ec   : > { %v595_v19 = vpop.permute.xlu0 %594 }
 0x1ed   : > { %v597_v20 = vmul.f32 %v595_v19, %v591_v18 }
 0x1ef   : > { %v599_v21 = vsel %vm598_vm4, %v597_v20, 0.0 }
 0x1f0   : > { %v600_v22 = vrot.slane %v599_v21, 4 }
 0x1f2   : > { %v601_v23 = vadd.f32 %v600_v22, %v599_v21 }
 0x1f4   : > { %v602_v24 = vrot.slane %v601_v23, 2 }
 0x1f6   : > { %v603_v25 = vadd.f32 %v602_v24, %v601_v23 }
 0x1f8   : > { %v604_v26 = vrot.slane %v603_v25, 1 }
 0x1fa   : > { %v605_v28 = vadd.f32 %v604_v26, %v603_v25 }
 0x1fc   : > { %v607_v29 = vadd.f32 %v606_v27, %v605_v28 }
 0x1fe   : > { %609 = vst.msk [vmem:[%s1188_s8] sm:$0x1] %vm608_vm5, %v607_v29 }
 0x1ff PF: > { %s619_s21 = scalar_lea.hbm %s1313_s5, %s990_s24  ;;  %s621_s12 = sshll.u32 %s1188_s8, 4  ;;  %s622_s12 = int_to_ptr.vmem [resolvable:$true] %s621_s12 }
 0x200   : > { %s623_s13 = sshll.u32 %s619_s21, 4  ;;  %s611_s10 = scalar_lea.sflag [#allocation5], %s294_s17  ;;  %s624_s13 = int_to_ptr.hbm [resolvable:$true] %s623_s13 }
 0x201   : > { %s906_s7 = sshra.s32 %s624_s13, 4  ;;  %s912_s28 = scalar_lea.hbm %s1313_s5, 2  ;;  %s907_s7 = int_to_ptr.hbm [resolvable:$true] %s906_s7 }
 0x202   : > { %s908_s9 = scalar_lea.hbm %s907_s7, 1  ;;  %p913_p9 = scmp.lt.s32.totalorder %s907_s7, %s1313_s5 }
 0x203   : > { %p909_p5 = scmp.ne.s32.totalorder %s907_s7, %s908_s9  ;;  %p914_p10 = scmp.lt.s32.totalorder %s912_s28, %s908_s9 }
 0x205   : > { %p910_p6 = pnand %p909_p5, %p1109_p7  ;;  %p915_p11 = por %p914_p10, %p913_p9 }
 0x207   : > { %p911_p8 = pneg %p910_p6 }
 0x209   : > { %p916_p13 = pnand %p915_p11, %p911_p8 }
 0x20b   : > { %919 = shalt.err (!%p916_p13)
}
 0x20c   : > { %800 = dma.vmem_to_hbm [thread:$0]  (%p1109_p7), %s622_s12, 16, %s624_s13, %s611_s10  }
 0x20d PF: > { %p806_p0 = scmp.ge.s32.totalorder %s1002_s27, 2  ;;  %s635_s24 = sand.u32 1, %s966_s18  }
 0x20e   : > { %s636_s17 = scalar_lea.sflag [#allocation5], %s635_s24 }
 0x20f   : > { %p803_p1 = pnand %p806_p0, %p1117_p12 }
 0x211   : > { %p804_p2 = pneg %p803_p1 }
 0x213   : > { %961 = dma.done.wait (%p804_p2), %s636_s17, 16  }
 0x214   : > { %963 = vsyncadd (%p804_p2), %s636_s17, 4294967280  ;;  %s18_s27 = sadd.s32 1, %s1002_s27   ;;  %s1321_s0 = sld [smem:[#allocation7_spill]] }
 0x215   : > { %p15_p3 = scmp.ge.s32.totalorder %s18_s27, 6   ;;  %s1322_s18 = smov %s970_s19 }
 0x216   : > { %s1323_s19 = smov %s974_s20  ;;  %s1324_s20 = smov %s1122_s15 }
 0x217   : > { %s1325_s21 = smov %s982_s22  ;;  %s1326_s22 = smov %s1125_s16 }
 0x218   : > { %s1327_s23 = smov %s994_s25  ;;  %s1328_s24 = smov %s998_s26 }
 0x219   : > { %s1329_s25 = smov %s1332_s30  ;;  %17 = sbr.rel (!%p15_p3) target bundleno = 8 (0x8), region = 111 }
 0x21a   : > { %s1330_s26 = smov %s1321_s0 }
 0x21e   :  { %641 = vsyncpa [#allocation5], 1 }
 0x21f   :  { %643 = vsyncpa [#allocation5 + $0x1], 1 }

</bundles_post_ra>
